<compile_context>
chip_gen: v6e
topology: v6e:2x2x1
jax: 0.10.0
libtpu: 0.0.40
codegen_flags: <defaults>
</compile_context>

<pallas_src>
import functools

import jax
import jax.numpy as jnp
from jax import lax
from jax.experimental import pallas as pl
from jax.experimental.pallas import tpu as pltpu

BN_EPS = 1e-5  # nn.BatchNorm2d default eps


def _round_up(x, m):
    return (x + m - 1) // m * m


# --------------------------- Pallas kernels -------------------------------- #
def _gate_stats_kernel(xph_ref, w_ref, b_ref, gated_ref, stats_ref,
                       *, m_true, tile_m, needs_mask):
    """Pass 1: fused block-diagonal matmul + gating; accumulate BN sum / sumsq."""
    i = pl.program_id(0)

    @pl.when(i == 0)
    def _():
        stats_ref[...] = jnp.zeros_like(stats_ref)

    cp = gated_ref.shape[-1]                       # padded Cout (multiple of 128)

    acts = jnp.dot(xph_ref[...], w_ref[...],
                   preferred_element_type=jnp.float32) + b_ref[...]
    a1 = acts[:, 0 * cp:1 * cp]
    a2 = acts[:, 1 * cp:2 * cp]
    c1 = acts[:, 2 * cp:3 * cp]
    c2 = acts[:, 3 * cp:4 * cp]

    gated = jnp.tanh(a1) * jax.nn.sigmoid(a2) + jnp.tanh(c1) * jax.nn.sigmoid(c2)
    gated_ref[...] = gated

    if needs_mask:  # rows beyond the true M (padding tiles) must not enter BN stats
        row = i * tile_m + lax.broadcasted_iota(jnp.int32, (tile_m, cp), 0)
        gated = jnp.where(row < m_true, gated, 0.0)

    s = jnp.sum(gated, axis=0, keepdims=True)            # (1, cp)
    ss = jnp.sum(gated * gated, axis=0, keepdims=True)   # (1, cp)
    stats_ref[...] += jnp.concatenate([s, ss], axis=0)   # (2, cp) resident accumulator


def _bn_norm_kernel(gated_ref, stats_ref, gb_ref, out_ref, *, m_true):
    """Pass 2: normalize each tile with the global batch statistics (in place)."""
    st = stats_ref[...]                                   # (2, cp): [sum; sumsq]
    mean = st[0:1, :] * (1.0 / m_true)
    var = st[1:2, :] * (1.0 / m_true) - mean * mean       # biased variance
    scale = gb_ref[0:1, :] * lax.rsqrt(var + BN_EPS)      # gamma * inv_std
    shift = gb_ref[1:2, :] - mean * scale                 # beta - mean*scale
    out_ref[...] = gated_ref[...] * scale + shift


# ------------------------------ glue (JAX) --------------------------------- #
def _make_mask(mask_type, cout, cin, kh, kw):
    assert mask_type in ('A', 'B')
    mask = jnp.ones((cout, cin, kh, kw), jnp.float32)
    mask = mask.at[:, :, kh // 2, kw // 2 + (mask_type == 'B'):].set(0.0)
    mask = mask.at[:, :, kh // 2 + 1:, :].set(0.0)
    return mask


def init_params(key, in_channels, out_channels, kernel_size):
    ks = jax.random.split(key, 8)
    kh = kw = kernel_size

    def u(k, shape, fan_in):
        bound = 1.0 / float(fan_in) ** 0.5
        return jax.random.uniform(k, shape, jnp.float32, -bound, bound)

    fan_m = in_channels * kh * kw
    fan_c = 3
    return dict(
        w1=u(ks[0], (out_channels, in_channels, kh, kw), fan_m),
        b1=u(ks[1], (out_channels,), fan_m),
        w2=u(ks[2], (out_channels, in_channels, kh, kw), fan_m),
        b2=u(ks[3], (out_channels,), fan_m),
        cw1=u(ks[4], (out_channels, 3, 1, 1), fan_c),
        cb1=u(ks[5], (out_channels,), fan_c),
        cw2=u(ks[6], (out_channels, 3, 1, 1), fan_c),
        cb2=u(ks[7], (out_channels,), fan_c),
        gamma=jnp.ones((out_channels,), jnp.float32),   # BatchNorm2d default init
        beta=jnp.zeros((out_channels,), jnp.float32),
    )


@functools.partial(jax.jit,
                   static_argnames=("mask_type", "kernel_size", "padding", "tile_m"))
def conditional_cnn_block(x, h, params, mask_type='A', kernel_size=3, padding=1,
                          tile_m=1024):
    N, Cin, H, W = x.shape
    Cout = params["w1"].shape[0]
    KH = KW = kernel_size
    M = N * H * W
    K = KH * KW * Cin
    Kin = K + 3
    Cp = _round_up(Cout, 128)                     # lane-dense padded channel dim

    tile_m = min(tile_m, _round_up(M, 8))
    M_pad = _round_up(M, tile_m)
    num_tiles = M_pad // tile_m
    needs_mask = (M_pad != M)

    # ---- parameter packing (masked + fused block-diagonal weight, fused biases) ----
    mask = _make_mask(mask_type, Cout, Cin, KH, KW)

    def prep_masked_w(w):  # (Cout, Cin, KH, KW) -> (KH*KW*Cin, Cout), mask applied
        return jnp.transpose(w * mask, (2, 3, 1, 0)).reshape(K, Cout)

    def pad_c(a):          # (r, Cout) -> (r, Cp)
        return jnp.pad(a, ((0, 0), (0, Cp - Cout)))

    wm1 = pad_c(prep_masked_w(params["w1"]))
    wm2 = pad_c(prep_masked_w(params["w2"]))
    cw1 = pad_c(jnp.transpose(params["cw1"][:, :, 0, 0], (1, 0)))
    cw2 = pad_c(jnp.transpose(params["cw2"][:, :, 0, 0], (1, 0)))

    w_fused = jnp.concatenate([
        jnp.concatenate([wm1, wm2, jnp.zeros((K, 2 * Cp), jnp.float32)], axis=1),
        jnp.concatenate([jnp.zeros((3, 2 * Cp), jnp.float32), cw1, cw2], axis=1),
    ], axis=0)                                                        # (Kin, 4*Cp)

    def pad_row(v):        # (Cout,) -> (1, Cp)
        return pad_c(v.reshape(1, Cout))

    bias = jnp.concatenate([pad_row(params["b1"]), pad_row(params["b2"]),
                            pad_row(params["cb1"]), pad_row(params["cb2"])],
                           axis=1)                                    # (1, 4*Cp)
    gamma_beta = jnp.concatenate([pad_row(params["gamma"]),
                                  pad_row(params["beta"])], axis=0)   # (2, Cp)

    # ---- im2col (wrapper-side) + conditioning concat -> single (M_pad, Kin) operand ----
    x_nhwc = jnp.transpose(x, (0, 2, 3, 1))
    xpad = jnp.pad(x_nhwc, ((0, 0), (padding, padding), (padding, padding), (0, 0)))
    cols = [xpad[:, dy:dy + H, dx:dx + W, :] for dy in range(KH) for dx in range(KW)]
    patches = jnp.concatenate(cols, axis=-1).reshape(M, K)
    h_mat = jnp.transpose(h, (0, 2, 3, 1)).reshape(M, 3)
    xph = jnp.concatenate([patches, h_mat], axis=1)                   # (M, Kin)
    if needs_mask:
        xph = jnp.pad(xph, ((0, M_pad - M), (0, 0)))

    # ---- pass 1: gating + global BN statistics (resident accumulator output) ----
    gate_kernel = functools.partial(_gate_stats_kernel, m_true=M, tile_m=tile_m,
                                    needs_mask=needs_mask)
    gated, stats = pl.pallas_call(
        gate_kernel,
        out_shape=(jax.ShapeDtypeStruct((M_pad, Cp), jnp.float32),
                   jax.ShapeDtypeStruct((2, Cp), jnp.float32)),
        grid=(num_tiles,),
        in_specs=[pl.BlockSpec((tile_m, Kin), lambda i: (i, 0)),
                  pl.BlockSpec((Kin, 4 * Cp), lambda i: (0, 0)),
                  pl.BlockSpec((1, 4 * Cp), lambda i: (0, 0))],
        out_specs=(pl.BlockSpec((tile_m, Cp), lambda i: (i, 0)),
                   pl.BlockSpec((2, Cp), lambda i: (0, 0))),
        compiler_params=pltpu.CompilerParams(dimension_semantics=("arbitrary",)),
    )(xph, w_fused, bias)

    # ---- pass 2: normalize in place (aliased), megacore-parallel over tiles ----
    bn_kernel = functools.partial(_bn_norm_kernel, m_true=M)
    out_flat = pl.pallas_call(
        bn_kernel,
        out_shape=jax.ShapeDtypeStruct((M_pad, Cp), jnp.float32),
        grid=(num_tiles,),
        in_specs=[pl.BlockSpec((tile_m, Cp), lambda i: (i, 0)),
                  pl.BlockSpec((2, Cp), lambda i: (0, 0)),
                  pl.BlockSpec((2, Cp), lambda i: (0, 0))],
        out_specs=pl.BlockSpec((tile_m, Cp), lambda i: (i, 0)),
        input_output_aliases={0: 0},
        compiler_params=pltpu.CompilerParams(dimension_semantics=("parallel",)),
    )(gated, stats, gamma_beta)

    out = out_flat[:M, :Cout].reshape(N, H, W, Cout)
    return jnp.transpose(out, (0, 3, 1, 2))


# --------------------------- pure-JAX reference ---------------------------- #
def reference(x, h, params, mask_type='A', padding=1):
    Cout, Cin, KH, KW = params["w1"].shape
    mask = _make_mask(mask_type, Cout, Cin, KH, KW)

    def conv(inp, w, b, pad):
        y = lax.conv_general_dilated(
            inp, w, window_strides=(1, 1), padding=[(pad, pad), (pad, pad)],
            dimension_numbers=('NCHW', 'OIHW', 'NCHW'))
        return y + b[None, :, None, None]

    a = jnp.tanh(conv(x, params["w1"] * mask, params["b1"], padding)) * \
        jax.nn.sigmoid(conv(x, params["w2"] * mask, params["b2"], padding))
    c = jnp.tanh(conv(h, params["cw1"], params["cb1"], 0)) * \
        jax.nn.sigmoid(conv(h, params["cw2"], params["cb2"], 0))
    g = a + c
    mean = g.mean(axis=(0, 2, 3), keepdims=True)
    var = ((g - mean) ** 2).mean(axis=(0, 2, 3), keepdims=True)
    return (g - mean) * lax.rsqrt(var + BN_EPS) * params["gamma"][None, :, None, None] \
        + params["beta"][None, :, None, None]


if __name__ == "__main__":
    key = jax.random.PRNGKey(0)
    kx, kcond, kp = jax.random.split(key, 3)
    N, Cin, H, W, Cout, K = 2, 4, 16, 16, 8, 3

    x = jax.random.normal(kx, (N, Cin, H, W), jnp.float32)
    h = jax.random.normal(kcond, (N, 3, H, W), jnp.float32)
    params = init_params(kp, Cin, Cout, K)

    # tile_m=96 deliberately does not divide M=512: exercises multi-tile BN stat
    # accumulation AND the padded-row masking path.
    out = conditional_cnn_block(x, h, params, mask_type='A', kernel_size=K,
                                padding=1, tile_m=96)
    out = jax.block_until_ready(out)

    ref = reference(x, h, params, mask_type='A', padding=1)
    assert out.shape == (N, Cout, H, W), out.shape
    max_err = float(jnp.max(jnp.abs(out - ref)))
    assert jnp.allclose(out, ref, atol=1e-4, rtol=1e-4), f"max abs err {max_err}"
    print("KERNEL_OK")
</pallas_src>

<mosaic_0001>
module attributes {stable_mosaic.version = 11 : i64} {
  func.func @_gate_stats_kernel(%arg0: i32, %arg1: memref<96x39xf32, #tpu.memory_space<vmem>>, %arg2: memref<39x512xf32, #tpu.memory_space<vmem>>, %arg3: memref<1x512xf32, #tpu.memory_space<vmem>>, %arg4: memref<96x128xf32, #tpu.memory_space<vmem>>, %arg5: memref<2x128xf32, #tpu.memory_space<vmem>>) attributes {dimension_semantics = [#tpu.dimension_semantics<arbitrary>], iteration_bounds = array<i64: 6>, scalar_prefetch = 0 : i64, scratch_operands = 0 : i64, tpu.core_type = #tpu.core_type<tc>, window_params = [{transform_indices = @transform_0, window_bounds = array<i64: 96, 39>}, {pipeline_mode = #tpu.pipeline_mode<synchronous>, transform_indices = @transform_1, window_bounds = array<i64: 39, 512>}, {pipeline_mode = #tpu.pipeline_mode<synchronous>, transform_indices = @transform_2, window_bounds = array<i64: 1, 512>}, {transform_indices = @transform_3, window_bounds = array<i64: 96, 128>}, {pipeline_mode = #tpu.pipeline_mode<synchronous>, transform_indices = @transform_4, window_bounds = array<i64: 2, 128>}]} {
    %c0_i32 = arith.constant 0 : i32
    %0 = arith.cmpi eq, %arg0, %c0_i32 : i32
    %1 = arith.extui %0 : i1 to i32
    %c0_i32_0 = arith.constant 0 : i32
    %2 = arith.cmpi ne, %1, %c0_i32_0 : i32
    scf.if %2 {
      %cst_17 = arith.constant 0.000000e+00 : f32
      %46 = vector.broadcast %cst_17 : f32 to vector<2x128xf32>
      %c0_18 = arith.constant 0 : index
      %c0_19 = arith.constant 0 : index
      %47 = vector.load %arg5[%c0_18, %c0_19] : memref<2x128xf32, #tpu.memory_space<vmem>>, vector<2x128xf32>
      tpu.vector_store %arg5[%c0_18, %c0_19], %46 {strides = array<i32>} : memref<2x128xf32, #tpu.memory_space<vmem>>, vector<2x128xf32>,
    } else {
    }
    %c0 = arith.constant 0 : index
    %c0_1 = arith.constant 0 : index
    %3 = vector.load %arg1[%c0, %c0_1] : memref<96x39xf32, #tpu.memory_space<vmem>>, vector<96x39xf32>
    %c0_2 = arith.constant 0 : index
    %c0_3 = arith.constant 0 : index
    %4 = vector.load %arg2[%c0_2, %c0_3] : memref<39x512xf32, #tpu.memory_space<vmem>>, vector<39x512xf32>
    %cst = arith.constant dense<0.000000e+00> : vector<96x512xf32>
    %5 = tpu.matmul %3, %4, %cst {dimension_numbers = #tpu.dot_dimension_numbers<[1], [0], [0], [1], [0, 0, 1, 1], [], []>} : vector<96x39xf32>, vector<39x512xf32>, vector<96x512xf32> -> vector<96x512xf32>
    %c0_4 = arith.constant 0 : index
    %c0_5 = arith.constant 0 : index
    %6 = vector.load %arg3[%c0_4, %c0_5] : memref<1x512xf32, #tpu.memory_space<vmem>>, vector<1x512xf32>
    %7 = vector.broadcast %6 : vector<1x512xf32> to vector<96x512xf32>
    %8 = arith.addf %5, %7 : vector<96x512xf32>
    %9 = vector.extract_strided_slice %8 {offsets = [0, 0], sizes = [96, 128], strides = [1, 1]} : vector<96x512xf32> to vector<96x128xf32>
    %10 = vector.extract_strided_slice %8 {offsets = [0, 128], sizes = [96, 128], strides = [1, 1]} : vector<96x512xf32> to vector<96x128xf32>
    %11 = vector.extract_strided_slice %8 {offsets = [0, 256], sizes = [96, 128], strides = [1, 1]} : vector<96x512xf32> to vector<96x128xf32>
    %12 = vector.extract_strided_slice %8 {offsets = [0, 384], sizes = [96, 128], strides = [1, 1]} : vector<96x512xf32> to vector<96x128xf32>
    %13 = math.tanh %9 : vector<96x128xf32>
    %14 = arith.negf %10 : vector<96x128xf32>
    %15 = math.exp %14 : vector<96x128xf32>
    %cst_6 = arith.constant 1.000000e+00 : f32
    %16 = vector.broadcast %cst_6 : f32 to vector<96x128xf32>
    %17 = arith.addf %16, %15 : vector<96x128xf32>
    %18 = arith.divf %16, %17 : vector<96x128xf32>
    %19 = arith.mulf %13, %18 : vector<96x128xf32>
    %20 = math.tanh %11 : vector<96x128xf32>
    %21 = arith.negf %12 : vector<96x128xf32>
    %22 = math.exp %21 : vector<96x128xf32>
    %cst_7 = arith.constant 1.000000e+00 : f32
    %23 = vector.broadcast %cst_7 : f32 to vector<96x128xf32>
    %24 = arith.addf %23, %22 : vector<96x128xf32>
    %25 = arith.divf %23, %24 : vector<96x128xf32>
    %26 = arith.mulf %20, %25 : vector<96x128xf32>
    %27 = arith.addf %19, %26 : vector<96x128xf32>
    %c0_8 = arith.constant 0 : index
    %c0_9 = arith.constant 0 : index
    %28 = vector.load %arg4[%c0_8, %c0_9] : memref<96x128xf32, #tpu.memory_space<vmem>>, vector<96x128xf32>
    tpu.vector_store %arg4[%c0_8, %c0_9], %27 {strides = array<i32>} : memref<96x128xf32, #tpu.memory_space<vmem>>, vector<96x128xf32>,
    %c96_i32 = arith.constant 96 : i32
    %29 = arith.muli %arg0, %c96_i32 : i32
    %30 = tpu.iota {dimensions = array<i32: 0>} : vector<96x128xi32>
    %31 = vector.broadcast %29 : i32 to vector<96x128xi32>
    %32 = arith.addi %31, %30 : vector<96x128xi32>
    %c512_i32 = arith.constant 512 : i32
    %33 = vector.broadcast %c512_i32 : i32 to vector<96x128xi32>
    %34 = arith.cmpi slt, %32, %33 : vector<96x128xi32>
    %cst_10 = arith.constant 0.000000e+00 : f32
    %35 = vector.broadcast %cst_10 : f32 to vector<96x128xf32>
    %36 = arith.select %34, %27, %35 : vector<96x128xi1>, vector<96x128xf32>
    %cst_11 = arith.constant dense<0.000000e+00> : vector<128xf32>
    %37 = vector.multi_reduction <add>, %36, %cst_11 [0] : vector<96x128xf32> to vector<128xf32>
    %38 = vector.shape_cast %37 : vector<128xf32> to vector<1x128xf32>
    %39 = arith.mulf %36, %36 : vector<96x128xf32>
    %cst_12 = arith.constant dense<0.000000e+00> : vector<128xf32>
    %40 = vector.multi_reduction <add>, %39, %cst_12 [0] : vector<96x128xf32> to vector<128xf32>
    %41 = vector.shape_cast %40 : vector<128xf32> to vector<1x128xf32>
    %c0_13 = arith.constant 0 : index
    %c0_14 = arith.constant 0 : index
    %42 = vector.load %arg5[%c0_13, %c0_14] : memref<2x128xf32, #tpu.memory_space<vmem>>, vector<2x128xf32>
    %43 = tpu.concatenate %38, %41 in 0 : vector<1x128xf32>, vector<1x128xf32> -> vector<2x128xf32>
    %44 = arith.addf %42, %43 : vector<2x128xf32>
    %c0_15 = arith.constant 0 : index
    %c0_16 = arith.constant 0 : index
    %45 = vector.load %arg5[%c0_15, %c0_16] : memref<2x128xf32, #tpu.memory_space<vmem>>, vector<2x128xf32>
    tpu.vector_store %arg5[%c0_15, %c0_16], %44 {strides = array<i32>} : memref<2x128xf32, #tpu.memory_space<vmem>>, vector<2x128xf32>,
    return
  }
  func.func @transform_0(%arg0: i32) -> (i32, i32) {
    %c0_i32 = arith.constant 0 : i32
    %c0_i32_0 = arith.constant 0 : i32
    return %arg0, %c0_i32 : i32, i32
  }
  func.func @transform_1(%arg0: i32) -> (i32, i32) {
    %c0_i32 = arith.constant 0 : i32
    %c0_i32_0 = arith.constant 0 : i32
    %c0_i32_1 = arith.constant 0 : i32
    return %c0_i32, %c0_i32_0 : i32, i32
  }
  func.func @transform_2(%arg0: i32) -> (i32, i32) {
    %c0_i32 = arith.constant 0 : i32
    %c0_i32_0 = arith.constant 0 : i32
    %c0_i32_1 = arith.constant 0 : i32
    return %c0_i32, %c0_i32_0 : i32, i32
  }
  func.func @transform_3(%arg0: i32) -> (i32, i32) {
    %c0_i32 = arith.constant 0 : i32
    %c0_i32_0 = arith.constant 0 : i32
    return %arg0, %c0_i32 : i32, i32
  }
  func.func @transform_4(%arg0: i32) -> (i32, i32) {
    %c0_i32 = arith.constant 0 : i32
    %c0_i32_0 = arith.constant 0 : i32
    %c0_i32_1 = arith.constant 0 : i32
    return %c0_i32, %c0_i32_0 : i32, i32
  }
}

module attributes {stable_mosaic.version = 11 : i64} {
  func.func @_bn_norm_kernel(%arg0: i32, %arg1: memref<96x128xf32, #tpu.memory_space<vmem>>, %arg2: memref<2x128xf32, #tpu.memory_space<vmem>>, %arg3: memref<2x128xf32, #tpu.memory_space<vmem>>, %arg4: memref<96x128xf32, #tpu.memory_space<vmem>>) attributes {dimension_semantics = [#tpu.dimension_semantics<parallel>], iteration_bounds = array<i64: 6>, scalar_prefetch = 0 : i64, scratch_operands = 0 : i64, tpu.core_type = #tpu.core_type<tc>, window_params = [{transform_indices = @transform_0, window_bounds = array<i64: 96, 128>}, {pipeline_mode = #tpu.pipeline_mode<synchronous>, transform_indices = @transform_1, window_bounds = array<i64: 2, 128>}, {pipeline_mode = #tpu.pipeline_mode<synchronous>, transform_indices = @transform_2, window_bounds = array<i64: 2, 128>}, {transform_indices = @transform_3, window_bounds = array<i64: 96, 128>}]} {
    %c0 = arith.constant 0 : index
    %c0_0 = arith.constant 0 : index
    %0 = vector.load %arg2[%c0, %c0_0] : memref<2x128xf32, #tpu.memory_space<vmem>>, vector<2x128xf32>
    %1 = vector.extract_strided_slice %0 {offsets = [0, 0], sizes = [1, 128], strides = [1, 1]} : vector<2x128xf32> to vector<1x128xf32>
    %cst = arith.constant 0.001953125 : f32
    %2 = vector.broadcast %cst : f32 to vector<1x128xf32>
    %3 = arith.mulf %1, %2 : vector<1x128xf32>
    %4 = vector.extract_strided_slice %0 {offsets = [1, 0], sizes = [1, 128], strides = [1, 1]} : vector<2x128xf32> to vector<1x128xf32>
    %cst_1 = arith.constant 0.001953125 : f32
    %5 = vector.broadcast %cst_1 : f32 to vector<1x128xf32>
    %6 = arith.mulf %4, %5 : vector<1x128xf32>
    %7 = arith.mulf %3, %3 : vector<1x128xf32>
    %8 = arith.subf %6, %7 : vector<1x128xf32>
    %c0_2 = arith.constant 0 : index
    %c0_3 = arith.constant 0 : index
    %9 = vector.load %arg3[%c0_2, %c0_3] : memref<2x128xf32, #tpu.memory_space<vmem>>, vector<1x128xf32>
    %cst_4 = arith.constant 9.99999974E-6 : f32
    %10 = vector.broadcast %cst_4 : f32 to vector<1x128xf32>
    %11 = arith.addf %8, %10 : vector<1x128xf32>
    %12 = math.rsqrt %11 : vector<1x128xf32>
    %13 = arith.mulf %9, %12 : vector<1x128xf32>
    %c1 = arith.constant 1 : index
    %c0_5 = arith.constant 0 : index
    %14 = vector.load %arg3[%c1, %c0_5] : memref<2x128xf32, #tpu.memory_space<vmem>>, vector<1x128xf32>
    %15 = arith.mulf %3, %13 : vector<1x128xf32>
    %16 = arith.subf %14, %15 : vector<1x128xf32>
    %c0_6 = arith.constant 0 : index
    %c0_7 = arith.constant 0 : index
    %17 = vector.load %arg1[%c0_6, %c0_7] : memref<96x128xf32, #tpu.memory_space<vmem>>, vector<96x128xf32>
    %18 = vector.broadcast %13 : vector<1x128xf32> to vector<96x128xf32>
    %19 = arith.mulf %17, %18 : vector<96x128xf32>
    %20 = vector.broadcast %16 : vector<1x128xf32> to vector<96x128xf32>
    %21 = arith.addf %19, %20 : vector<96x128xf32>
    %c0_8 = arith.constant 0 : index
    %c0_9 = arith.constant 0 : index
    %22 = vector.load %arg4[%c0_8, %c0_9] : memref<96x128xf32, #tpu.memory_space<vmem>>, vector<96x128xf32>
    tpu.vector_store %arg4[%c0_8, %c0_9], %21 {strides = array<i32>} : memref<96x128xf32, #tpu.memory_space<vmem>>, vector<96x128xf32>,
    return
  }
  func.func @transform_0(%arg0: i32) -> (i32, i32) {
    %c0_i32 = arith.constant 0 : i32
    %c0_i32_0 = arith.constant 0 : i32
    return %arg0, %c0_i32 : i32, i32
  }
  func.func @transform_1(%arg0: i32) -> (i32, i32) {
    %c0_i32 = arith.constant 0 : i32
    %c0_i32_0 = arith.constant 0 : i32
    %c0_i32_1 = arith.constant 0 : i32
    return %c0_i32, %c0_i32_0 : i32, i32
  }
  func.func @transform_2(%arg0: i32) -> (i32, i32) {
    %c0_i32 = arith.constant 0 : i32
    %c0_i32_0 = arith.constant 0 : i32
    %c0_i32_1 = arith.constant 0 : i32
    return %c0_i32, %c0_i32_0 : i32, i32
  }
  func.func @transform_3(%arg0: i32) -> (i32, i32) {
    %c0_i32 = arith.constant 0 : i32
    %c0_i32_0 = arith.constant 0 : i32
    return %arg0, %c0_i32 : i32, i32
  }
}

</mosaic_0001>

<bundles_post_ra>
// kernel: conditional_cnn_block.3
= control target key start
LH: loop header
LB: loop body
LE: loop exit
PB: predicated region body
PF: predicated region fallthrough
CT: control target
= control target key end

     0   :  { %s350_s12 = smov 0   ;;  %s383_s0 = inlined_call_operand.vmem [shape: f32[576,128], index: 0, kind: input, shape index: {}, may-alias: {0,3}]   ;;  %s384_s1 = inlined_call_operand.vmem [shape: f32[2,128], index: 1, kind: input, shape index: {}]   ;;  %s385_s2 = inlined_call_operand.vmem [shape: f32[2,128], index: 2, kind: input, shape index: {}]   ;;  %s386_s3 = inlined_call_operand.vmem [shape: f32[576,128], index: 3, kind: output, shape index: {}, may-alias: {0,3}]  }
   0x1 LB: > { %s303_s13 = sadd.s32 4294967295, %s328_s12   ;;  %p307_p0 = scmp.ge.s32.totalorder %s328_s12, 1  ;;  %s328_s12 = sphi %s350_s12, %s13_s12  }
   0x2   : > { %p138_p1 = scmp.lt.s32.totalorder %s328_s12, 7 }
   0x4   : > { %p139_p2 = pnand %p307_p0, %p138_p1 }
   0x5   : > { %s162_s16 = smul.u32 (!%p139_p2), 12, %s303_s13 }
   0x6   : > { %142 = sbr.rel (%p139_p2) target bundleno = 56 (0x38), region = 32 }
   0x7   : > { %p163_p3 = scmp.lt.s32.totalorder (!%p139_p2), %s162_s16, 71 }
   0xb   : > { %v174_v0 = vld [vmem:[%s384_s1] sm:$0x3]  ;;  %v203_v6 = vlaneseq  ;;  %s388_s16 = smov (!%p163_p3, %s162_s16), 71 }
   0xc   : > { %v175_v1 = vmul.f32 0.001953125, %v174_v0  ;;  %s308_s17 = sshll.u32 %s388_s16, 3  ;;  %v181_v9 = vld [vmem:[%s385_s2] sm:$0x1]  ;;  %v188_v13 = vld [vmem:[%s385_s2 + $0x1] sm:$0x1] }
   0xd   : > { %v204_v7 = vshrl.u32 %v203_v6, 7  ;;  %s166_s22 = scalar_lea.vmem %s383_s0, %s308_s17  ;;  %s172_s27 = scalar_lea.vmem %s386_s3, %s308_s17 }
   0xe   : > { %v176_v2 = vmul.f32 %v175_v1, %v175_v1  ;;  %v191_v14 = vld [vmem:[%s166_s22] sm:$0xff]  ;;  %v192_v15 = vld [vmem:[%s166_s22 + $0x8] sm:$0xff]  ;;  %v193_v16 = vld [vmem:[%s166_s22 + $0x10] sm:$0xff] }
   0xf   : > { %v205_v11 = vsub.s32 0, %v204_v7  ;;  %v194_v18 = vld [vmem:[%s166_s22 + $0x18] sm:$0xff]  ;;  %v195_v19 = vld [vmem:[%s166_s22 + $0x20] sm:$0xff]  ;;  %v196_v20 = vld [vmem:[%s166_s22 + $0x28] sm:$0xff] }
  0x10   : > { %v178_v3 = vrot.slane %v176_v2, 7  ;;  %v197_v22 = vld [vmem:[%s166_s22 + $0x30] sm:$0xff]  ;;  %v198_v23 = vld [vmem:[%s166_s22 + $0x38] sm:$0xff]  ;;  %v199_v24 = vld [vmem:[%s166_s22 + $0x40] sm:$0xff] }
  0x11   : > { %v200_v26 = vld [vmem:[%s166_s22 + $0x48] sm:$0xff]  ;;  %v201_v27 = vld [vmem:[%s166_s22 + $0x50] sm:$0xff]  ;;  %v202_v28 = vld [vmem:[%s166_s22 + $0x58] sm:$0xff] }
  0x12   : > { %v180_v4 = vsub.f32 %v175_v1, %v178_v3 }
  0x14   : > { %v182_v5 = vadd.f32 1e-05, %v180_v4 }
  0x16   : > { %320 = vrsqrt.f32 %v182_v5 }
  0x23   : > { %v321_v8 = vpop.eup %320 }
  0x24   : > { %v185_v10 = vrot.slane %v321_v8, 1 }
  0x26   : > { %v187_v12 = vmul.f32 %v185_v10, %v181_v9 }
  0x28   : > { %v189_v17 = vmul.f32 %v187_v12, %v175_v1  ;;  %v206_v21 = vrot.slane %v187_v12, %v205_v11 }
  0x2a   : > { %v190_v25 = vsub.f32 %v188_v13, %v189_v17  ;;  %v207_v29 = vmul.f32 %v206_v21, %v191_v14  ;;  %v208_v30 = vmul.f32 %v206_v21, %v192_v15  ;;  %v209_v31 = vmul.f32 %v206_v21, %v193_v16 }
  0x2b   : > { %v210_v32 = vmul.f32 %v206_v21, %v194_v18  ;;  %v211_v33 = vmul.f32 %v206_v21, %v195_v19  ;;  %v212_v34 = vmul.f32 %v206_v21, %v196_v20  ;;  %v213_v35 = vmul.f32 %v206_v21, %v197_v22 }
  0x2c   : > { %v214_v36 = vmul.f32 %v206_v21, %v198_v23  ;;  %v215_v37 = vmul.f32 %v206_v21, %v199_v24  ;;  %v216_v38 = vmul.f32 %v206_v21, %v200_v26  ;;  %v217_v39 = vmul.f32 %v206_v21, %v201_v27 }
  0x2d   : > { %v218_v40 = vmul.f32 %v206_v21, %v202_v28  ;;  %v222_v41 = vrot.slane %v190_v25, %v205_v11 }
  0x2f   : > { %v223_v42 = vadd.f32 %v222_v41, %v207_v29  ;;  %v224_v43 = vadd.f32 %v222_v41, %v208_v30  ;;  %v225_v44 = vadd.f32 %v222_v41, %v209_v31  ;;  %v226_v45 = vadd.f32 %v222_v41, %v210_v32 }
  0x30   : > { %v227_v46 = vadd.f32 %v222_v41, %v211_v33  ;;  %v228_v47 = vadd.f32 %v222_v41, %v212_v34  ;;  %v229_v48 = vadd.f32 %v222_v41, %v213_v35  ;;  %v230_v49 = vadd.f32 %v222_v41, %v214_v36 }
  0x31   : > { %v231_v50 = vadd.f32 %v222_v41, %v215_v37  ;;  %v232_v51 = vadd.f32 %v222_v41, %v216_v38  ;;  %v233_v52 = vadd.f32 %v222_v41, %v217_v39  ;;  %v234_v53 = vadd.f32 %v222_v41, %v218_v40  ;;  %235 = vst [vmem:[%s172_s27] sm:$0xff] %v223_v42 }
  0x32   : > { %236 = vst [vmem:[%s172_s27 + $0x8] sm:$0xff] %v224_v43  ;;  %237 = vst [vmem:[%s172_s27 + $0x10] sm:$0xff] %v225_v44 }
  0x33   : > { %238 = vst [vmem:[%s172_s27 + $0x18] sm:$0xff] %v226_v45  ;;  %239 = vst [vmem:[%s172_s27 + $0x20] sm:$0xff] %v227_v46 }
  0x34   : > { %240 = vst [vmem:[%s172_s27 + $0x28] sm:$0xff] %v228_v47  ;;  %241 = vst [vmem:[%s172_s27 + $0x30] sm:$0xff] %v229_v48 }
  0x35   : > { %242 = vst [vmem:[%s172_s27 + $0x38] sm:$0xff] %v230_v49  ;;  %243 = vst [vmem:[%s172_s27 + $0x40] sm:$0xff] %v231_v50 }
  0x36   : > { %244 = vst [vmem:[%s172_s27 + $0x48] sm:$0xff] %v232_v51  ;;  %245 = vst [vmem:[%s172_s27 + $0x50] sm:$0xff] %v233_v52 }
  0x37   : > { %246 = vst [vmem:[%s172_s27 + $0x58] sm:$0xff] %v234_v53 }
  0x38 PF: > { %s13_s12 = sadd.s32 1, %s328_s12  }
  0x39   : > { %p10_p4 = scmp.ge.s32.totalorder %s13_s12, 8  }
  0x3b   :  { %12 = sbr.rel (!%p10_p4) target bundleno = 1 (0x1), region = 62 }

// kernel: conditional_cnn_block.2
= control target key start
LH: loop header
LB: loop body
LE: loop exit
PB: predicated region body
PF: predicated region fallthrough
CT: control target
= control target key end

     0   :  { %s1213_s15 = smov 0   ;;  %s1539_s0 = inlined_call_operand.vmem [shape: f32[576,39], index: 0, kind: input, shape index: {}]   ;;  %s1540_s1 = inlined_call_operand.vmem [shape: f32[39,512], index: 1, kind: input, shape index: {}]   ;;  %s1541_s2 = inlined_call_operand.vmem [shape: f32[1,512], index: 2, kind: input, shape index: {}]   ;;  %s1542_s3 = inlined_call_operand.vmem [shape: f32[576,128], index: 3, kind: output, shape index: {0}]   ;;  %s1543_s4 = inlined_call_operand.vmem [shape: f32[2,128], index: 4, kind: output, shape index: {1}]  }
   0x1 LB: > { %s1219_s16 = sadd.s32 4294967295, %s1184_s15   ;;  %p966_p0 = scmp.ge.s32.totalorder %s1184_s15, 1  ;;  %s1184_s15 = sphi %s1213_s15, %s15_s15  }
   0x2   : > { %p161_p1 = scmp.lt.s32.totalorder %s1184_s15, 7 }
   0x4   : > { %p162_p2 = pnand %p966_p0, %p161_p1 }
   0x5   : > { %s187_s17 = smul.u32 (!%p162_p2), 12, %s1219_s16  ;;  %p969_p4 = scmp.ne.s32.totalorder (!%p162_p2), %s1219_s16, 0 }
   0x6   : > { %165 = sbr.rel (%p162_p2) target bundleno = 347 (0x15b), region = 32 }
   0x7   : > { %p188_p3 = scmp.lt.s32.totalorder (!%p162_p2), %s187_s17, 71 }
   0xb   : > { %s1545_s17 = smov (!%p188_p3, %s187_s17), 71  ;;  %202 = sbr.rel (%p969_p4) target bundleno = 18 (0x12), region = 36 }
   0xc   : > { %s967_s18 = sshll.u32 %s1545_s17, 3 }
   0xd   : > { %s1227_s21 = scalar_lea.vmem %s1539_s0, %s967_s18  ;;  %s1232_s24 = scalar_lea.vmem %s1542_s3, %s967_s18 }
  0x10   : > { %v1186_v0 = vmov 0.0  }
  0x11   : > { %203 = vst [vmem:[%s1543_s4] sm:$0x3] %v1186_v0 }
  0x12 PF: > { %v233_v1 = vld [vmem:[%s1540_s1 + $0x88] sm:$0x7f]  ;;  %vm295_vm0 = vcmask 1046528   ;;  %v235_v2 = vld [vmem:[%s1540_s1 + $0x98] sm:$0x7f]  ;;  %v228_v7 = vld [vmem:[%s1540_s1 + $0x60] sm:$0xff]  ;;  %v238_v34 = vlaneseq }
  0x13   : > { %v229_v3 = vld [vmem:[%s1540_s1 + $0x68] sm:$0xff]  ;;  %970 = vmatprep.subr.msk.mxu0 %vm295_vm0, %v233_v1  ;;  %984 = vmatprep.subr.msk.mxu1 %vm295_vm0, %v235_v2  ;;  %v232_v4 = vld [vmem:[%s1540_s1 + $0x80] sm:$0x7f]  ;;  %v234_v5 = vld [vmem:[%s1540_s1 + $0x90] sm:$0x7f]  ;;  %vm258_vm1 = vcmask 318464  }
  0x14   : > { %v231_v6 = vld [vmem:[%s1540_s1 + $0x78] sm:$0xff]  ;;  %971 = vmatpush1.msk.msra.mxu0 %vm295_vm0, %v232_v4  ;;  %985 = vmatpush1.msk.msra.mxu1 %vm295_vm0, %v234_v5  ;;  %v230_v8 = vld [vmem:[%s1540_s1 + $0x70] sm:$0xff]  ;;  %v225_v9 = vld [vmem:[%s1540_s1 + $0x48] sm:$0xff]  ;;  %v1187_v22 = vmov 0.0   ;;  %v1334_v35 = vshrl.u32 %v238_v34, 7  ;;  %vm896_vm14 = vcmask 1040384  }
  0x15   : > { %332 = vmatprep.subr.mxu0 %v229_v3  ;;  %469 = vmatprep.subr.mxu1 %v231_v6  ;;  %v227_v10 = vld [vmem:[%s1540_s1 + $0x58] sm:$0xff]  ;;  %v224_v11 = vld [vmem:[%s1540_s1 + $0x40] sm:$0xff]  ;;  %v226_v12 = vld [vmem:[%s1540_s1 + $0x50] sm:$0xff] }
  0x16   : > { %333 = vmatpush1.msra.mxu0 %v228_v7  ;;  %470 = vmatpush1.msra.mxu1 %v230_v8  ;;  %v221_v13 = vld [vmem:[%s1540_s1 + $0x28] sm:$0xff]  ;;  %v223_v14 = vld [vmem:[%s1540_s1 + $0x38] sm:$0xff]  ;;  %v220_v15 = vld [vmem:[%s1540_s1 + $0x20] sm:$0xff]  ;;  %v244_v36 = vsub.s32 1, %v1334_v35  ;;  %v252_v37 = vsub.s32 3, %v1334_v35  ;;  %v240_v43 = vsub.s32 0, %v1334_v35 }
  0x17   : > { %334 = vmatprep.subr.mxu0 %v225_v9  ;;  %471 = vmatprep.subr.mxu1 %v227_v10  ;;  %v222_v16 = vld [vmem:[%s1540_s1 + $0x30] sm:$0xff]  ;;  %v217_v17 = vld [vmem:[%s1540_s1 + $0x8] sm:$0xff]  ;;  %v219_v18 = vld [vmem:[%s1540_s1 + $0x18] sm:$0xff]  ;;  %v248_v44 = vsub.s32 2, %v1334_v35 }
  0x18   : > { %335 = vmatpush1.msra.mxu0 %v224_v11  ;;  %472 = vmatpush1.msra.mxu1 %v226_v12  ;;  %v216_v19 = vld [vmem:[%s1540_s1] sm:$0xff]  ;;  %v218_v20 = vld [vmem:[%s1540_s1 + $0x10] sm:$0xff]  ;;  %v205_v23 = vld [vmem:[%s1227_s21 + $0x8] sm:$0xff] }
  0x19   : > { %336 = vmatprep.subr.mxu0 %v221_v13  ;;  %473 = vmatprep.subr.mxu1 %v223_v14  ;;  %v204_v21 = vld [vmem:[%s1227_s21] sm:$0xff]  ;;  %v206_v24 = vld [vmem:[%s1227_s21 + $0x10] sm:$0xff]  ;;  %v207_v25 = vld [vmem:[%s1227_s21 + $0x18] sm:$0xff] }
  0x1a   : > { %337 = vmatpush1.msra.mxu0 %v220_v15  ;;  %474 = vmatpush1.msra.mxu1 %v222_v16  ;;  %v208_v26 = vld [vmem:[%s1227_s21 + $0x20] sm:$0xff]  ;;  %v209_v27 = vld [vmem:[%s1227_s21 + $0x28] sm:$0xff]  ;;  %v210_v28 = vld [vmem:[%s1227_s21 + $0x30] sm:$0xff] }
  0x1b   : > { %338 = vmatprep.subr.mxu0 %v217_v17  ;;  %475 = vmatprep.subr.mxu1 %v219_v18  ;;  %v211_v29 = vld [vmem:[%s1227_s21 + $0x38] sm:$0xff]  ;;  %v212_v30 = vld [vmem:[%s1227_s21 + $0x40] sm:$0xff]  ;;  %v213_v31 = vld [vmem:[%s1227_s21 + $0x48] sm:$0xff] }
  0x1c   : > { %339 = vmatpush1.msra.mxu0 %v216_v19  ;;  %372 = vmatprep.mubr.f32.mxu0 %v1187_v22  ;;  %v214_v32 = vld [vmem:[%s1227_s21 + $0x50] sm:$0xff]  ;;  %v215_v33 = vld [vmem:[%s1227_s21 + $0x58] sm:$0xff]  ;;  %v236_v38 = vld [vmem:[%s1541_s2] sm:$0xf]  ;;  %s798_s21 = smul.u32 96, %s1219_s16 }
  0x1d   : > { %476 = vmatpush1.msra.mxu1 %v218_v20  ;;  %509 = vmatprep.mubr.f32.mxu1 %v1187_v22  ;;  %v1341_v39 = vrot.slane %v236_v38, %v244_v36  ;;  %v1343_v40 = vrot.slane %v236_v38, %v252_v37  ;;  %v1349_v51 = vrot.slane %v236_v38, %v240_v43 }
  0x1e   : > { %972 = vmatmul.mubr.msk.f32.vlgmr.msra.gmra.mxu0 %vm258_vm1, %v204_v21  ;;  %986 = vmatmul.mubr.msk.f32.vlgmr.msra.gmra.mxu1 %vm258_vm1, %v204_v21  ;;  %v1351_v54 = vrot.slane %v236_v38, %v248_v44 }
  0x1f   : > { %378 = vmatprep.mubr.f32.mxu0 %v1187_v22  ;;  %515 = vmatprep.mubr.f32.mxu1 %v1187_v22 }
  0x22   : > { %973 = vmatmul.mubr.msk.f32.gmra.mxu0 %vm258_vm1, %v205_v23  ;;  %987 = vmatmul.mubr.msk.f32.gmra.mxu1 %vm258_vm1, %v205_v23 }
  0x23   : > { %384 = vmatprep.mubr.f32.mxu0 %v1187_v22  ;;  %521 = vmatprep.mubr.f32.mxu1 %v1187_v22 }
  0x26   : > { %974 = vmatmul.mubr.msk.f32.gmra.mxu0 %vm258_vm1, %v206_v24  ;;  %988 = vmatmul.mubr.msk.f32.gmra.mxu1 %vm258_vm1, %v206_v24 }
  0x27   : > { %390 = vmatprep.mubr.f32.mxu0 %v1187_v22  ;;  %527 = vmatprep.mubr.f32.mxu1 %v1187_v22 }
  0x2a   : > { %975 = vmatmul.mubr.msk.f32.gmra.mxu0 %vm258_vm1, %v207_v25  ;;  %989 = vmatmul.mubr.msk.f32.gmra.mxu1 %vm258_vm1, %v207_v25 }
  0x2b   : > { %396 = vmatprep.mubr.f32.mxu0 %v1187_v22  ;;  %533 = vmatprep.mubr.f32.mxu1 %v1187_v22 }
  0x2e   : > { %976 = vmatmul.mubr.msk.f32.gmra.mxu0 %vm258_vm1, %v208_v26  ;;  %990 = vmatmul.mubr.msk.f32.gmra.mxu1 %vm258_vm1, %v208_v26 }
  0x2f   : > { %402 = vmatprep.mubr.f32.mxu0 %v1187_v22  ;;  %539 = vmatprep.mubr.f32.mxu1 %v1187_v22 }
  0x32   : > { %977 = vmatmul.mubr.msk.f32.gmra.mxu0 %vm258_vm1, %v209_v27  ;;  %991 = vmatmul.mubr.msk.f32.gmra.mxu1 %vm258_vm1, %v209_v27 }
  0x33   : > { %408 = vmatprep.mubr.f32.mxu0 %v1187_v22  ;;  %545 = vmatprep.mubr.f32.mxu1 %v1187_v22 }
  0x36   : > { %978 = vmatmul.mubr.msk.f32.gmra.mxu0 %vm258_vm1, %v210_v28  ;;  %992 = vmatmul.mubr.msk.f32.gmra.mxu1 %vm258_vm1, %v210_v28 }
  0x37   : > { %414 = vmatprep.mubr.f32.mxu0 %v1187_v22  ;;  %551 = vmatprep.mubr.f32.mxu1 %v1187_v22 }
  0x3a   : > { %979 = vmatmul.mubr.msk.f32.gmra.mxu0 %vm258_vm1, %v211_v29  ;;  %993 = vmatmul.mubr.msk.f32.gmra.mxu1 %vm258_vm1, %v211_v29 }
  0x3b   : > { %420 = vmatprep.mubr.f32.mxu0 %v1187_v22  ;;  %557 = vmatprep.mubr.f32.mxu1 %v1187_v22 }
  0x3e   : > { %980 = vmatmul.mubr.msk.f32.gmra.mxu0 %vm258_vm1, %v212_v30  ;;  %994 = vmatmul.mubr.msk.f32.gmra.mxu1 %vm258_vm1, %v212_v30 }
  0x3f   : > { %426 = vmatprep.mubr.f32.mxu0 %v1187_v22  ;;  %563 = vmatprep.mubr.f32.mxu1 %v1187_v22 }
  0x42   : > { %981 = vmatmul.mubr.msk.f32.gmra.mxu0 %vm258_vm1, %v213_v31  ;;  %995 = vmatmul.mubr.msk.f32.gmra.mxu1 %vm258_vm1, %v213_v31 }
  0x43   : > { %432 = vmatprep.mubr.f32.mxu0 %v1187_v22  ;;  %569 = vmatprep.mubr.f32.mxu1 %v1187_v22 }
  0x46   : > { %982 = vmatmul.mubr.msk.f32.gmra.mxu0 %vm258_vm1, %v214_v32  ;;  %996 = vmatmul.mubr.msk.f32.gmra.mxu1 %vm258_vm1, %v214_v32 }
  0x47   : > { %438 = vmatprep.mubr.f32.mxu0 %v1187_v22  ;;  %575 = vmatprep.mubr.f32.mxu1 %v1187_v22 }
  0x4a   : > { %983 = vmatmul.mubr.msk.f32.gmra.mxu0 %vm258_vm1, %v215_v33  ;;  %997 = vmatmul.mubr.msk.f32.gmra.mxu1 %vm258_vm1, %v215_v33 }
  0xde   : > { %v374_v41 = vpop.f32.mrf.mxu0  ;;  %v511_v42 = vpop.f32.mrf.mxu1 }
  0xdf   : > { %v375_v61 = vadd.f32 %v374_v41, %v1349_v51  ;;  %v512_v0 = vadd.f32 %v511_v42, %v1351_v54 }
  0xe0   : > { %v376_v45 = vpop.f32.mrf.mxu0  ;;  %v513_v46 = vpop.f32.mrf.mxu1 }
  0xe1   : > { %v377_v47 = vadd.f32 %v376_v45, %v1341_v39  ;;  %v514_v48 = vadd.f32 %v513_v46, %v1343_v40 }
  0xe2   : > { %v380_v49 = vpop.f32.mrf.mxu0  ;;  %v517_v50 = vpop.f32.mrf.mxu1 }
  0xe3   : > { %v998_v52 = vmul.f32 -1.442695, %v377_v47  ;;  %v1010_v53 = vmul.f32 -1.442695, %v514_v48  ;;  %v381_v7 = vadd.f32 %v380_v49, %v1349_v51  ;;  %v518_v10 = vadd.f32 %v517_v50, %v1351_v54 }
  0xe4   : > { %v382_v55 = vpop.f32.mrf.mxu0  ;;  %v519_v56 = vpop.f32.mrf.mxu1 }
  0xe5   : > { %1034 = vpow2.f32 %v998_v52  ;;  %v383_v57 = vadd.f32 %v382_v55, %v1341_v39  ;;  %v520_v58 = vadd.f32 %v519_v56, %v1343_v40 }
  0xe6   : > { %1036 = vpow2.f32 %v1010_v53  ;;  %v386_v59 = vpop.f32.mrf.mxu0  ;;  %v523_v60 = vpop.f32.mrf.mxu1 }
  0xe7   : > { %v999_v62 = vmul.f32 -1.442695, %v383_v57  ;;  %v1011_v63 = vmul.f32 -1.442695, %v520_v58  ;;  %v387_v17 = vadd.f32 %v386_v59, %v1349_v51  ;;  %v524_v20 = vadd.f32 %v523_v60, %v1351_v54 }
  0xe8   : > { %v388_v1 = vpop.f32.mrf.mxu0  ;;  %v525_v2 = vpop.f32.mrf.mxu1 }
  0xe9   : > { %1038 = vpow2.f32 %v999_v62  ;;  %v389_v3 = vadd.f32 %v388_v1, %v1341_v39  ;;  %v526_v4 = vadd.f32 %v525_v2, %v1343_v40 }
  0xea   : > { %1040 = vpow2.f32 %v1011_v63  ;;  %v392_v5 = vpop.f32.mrf.mxu0  ;;  %v529_v6 = vpop.f32.mrf.mxu1 }
  0xeb   : > { %1042 = vtanh.f32 %v375_v61  ;;  %v1000_v8 = vmul.f32 -1.442695, %v389_v3  ;;  %v1012_v9 = vmul.f32 -1.442695, %v526_v4  ;;  %v393_v43 = vadd.f32 %v392_v5, %v1349_v51 }
  0xec   : > { %1044 = vtanh.f32 %v512_v0  ;;  %v394_v11 = vpop.f32.mrf.mxu0  ;;  %v531_v12 = vpop.f32.mrf.mxu1  ;;  %v530_v47 = vadd.f32 %v529_v6, %v1351_v54 }
  0xed   : > { %1046 = vpow2.f32 %v1000_v8  ;;  %v395_v13 = vadd.f32 %v394_v11, %v1341_v39  ;;  %v532_v14 = vadd.f32 %v531_v12, %v1343_v40 }
  0xee   : > { %1048 = vpow2.f32 %v1012_v9  ;;  %v1363_v15 = vpop.f32.mrf.mxu0  ;;  %v1365_v16 = vpop.f32.mrf.mxu1 }
  0xef   : > { %1050 = vtanh.f32 %v381_v7  ;;  %v1001_v18 = vmul.f32 -1.442695, %v395_v13  ;;  %v1013_v19 = vmul.f32 -1.442695, %v532_v14  ;;  %v399_v9 = vadd.f32 %v1363_v15, %v1349_v51 }
  0xf0   : > { %1052 = vtanh.f32 %v518_v10  ;;  %v400_v21 = vpop.f32.mrf.mxu0  ;;  %v537_v22 = vpop.f32.mrf.mxu1  ;;  %v536_v12 = vadd.f32 %v1365_v16, %v1351_v54 }
  0xf1   : > { %1054 = vpow2.f32 %v1001_v18  ;;  %v401_v23 = vadd.f32 %v400_v21, %v1341_v39  ;;  %v538_v24 = vadd.f32 %v537_v22, %v1343_v40 }
  0xf2   : > { %v1035_v25 = vpop.eup %1034  ;;  %1056 = vpow2.f32 %v1013_v19  ;;  %v1371_v26 = vpop.f32.mrf.mxu0 }
  0xf3   : > { %v1373_v27 = vpop.f32.mrf.mxu1  ;;  %v1037_v28 = vpop.eup %1036  ;;  %v630_v29 = vadd.f32 1.0, %v1035_v25  ;;  %1058 = vtanh.f32 %v387_v17  ;;  %v1002_v30 = vmul.f32 -1.442695, %v401_v23  ;;  %v1014_v32 = vmul.f32 -1.442695, %v538_v24 }
  0xf4   : > { %v726_v31 = vadd.f32 1.0, %v1037_v28  ;;  %1060 = vtanh.f32 %v524_v20  ;;  %v406_v33 = vpop.f32.mrf.mxu0 }
  0xf5   : > { %v543_v34 = vpop.f32.mrf.mxu1  ;;  %1062 = vrcp.f32 %v630_v29  ;;  %v407_v44 = vadd.f32 %v406_v33, %v1341_v39 }
  0xf6   : > { %v1039_v36 = vpop.eup %1038  ;;  %1064 = vrcp.f32 %v726_v31  ;;  %v1375_v37 = vpop.f32.mrf.mxu0  ;;  %v544_v48 = vadd.f32 %v543_v34, %v1343_v40 }
  0xf7   : > { %v1377_v38 = vpop.f32.mrf.mxu1  ;;  %v1041_v41 = vpop.eup %1040  ;;  %v631_v42 = vadd.f32 1.0, %v1039_v36  ;;  %1066 = vpow2.f32 %v1002_v30  ;;  %v1003_v59 = vmul.f32 -1.442695, %v407_v44 }
  0xf8   : > { %v1043_v45 = vpop.eup %1042  ;;  %v727_v46 = vadd.f32 1.0, %v1041_v41  ;;  %1068 = vpow2.f32 %v1014_v32  ;;  %v412_v49 = vpop.f32.mrf.mxu0  ;;  %v1015_v62 = vmul.f32 -1.442695, %v544_v48 }
  0xf9   : > { %v549_v50 = vpop.f32.mrf.mxu1  ;;  %v1045_v52 = vpop.eup %1044  ;;  %1070 = vrcp.f32 %v631_v42  ;;  %v413_v2 = vadd.f32 %v412_v49, %v1341_v39 }
  0xfa   : > { %v1047_v53 = vpop.eup %1046  ;;  %1072 = vrcp.f32 %v727_v46  ;;  %v1383_v55 = vpop.f32.mrf.mxu0  ;;  %v550_v4 = vadd.f32 %v549_v50, %v1343_v40 }
  0xfb   : > { %v1385_v56 = vpop.f32.mrf.mxu1  ;;  %v1049_v57 = vpop.eup %1048  ;;  %v632_v58 = vadd.f32 1.0, %v1047_v53  ;;  %1074 = vtanh.f32 %v393_v43  ;;  %v1004_v17 = vmul.f32 -1.442695, %v413_v2  ;;  %v542_v53 = vadd.f32 %v1373_v27, %v1351_v54 }
  0xfc   : > { %v1051_v60 = vpop.eup %1050  ;;  %v728_v61 = vadd.f32 1.0, %v1049_v57  ;;  %1076 = vtanh.f32 %v530_v47  ;;  %v418_v63 = vpop.f32.mrf.mxu0  ;;  %v1016_v20 = vmul.f32 -1.442695, %v550_v4  ;;  %v405_v47 = vadd.f32 %v1371_v26, %v1349_v51 }
  0xfd   : > { %v555_v0 = vpop.f32.mrf.mxu1  ;;  %v1053_v1 = vpop.eup %1052  ;;  %1078 = vrcp.f32 %v632_v58  ;;  %v419_v15 = vadd.f32 %v418_v63, %v1341_v39 }
  0xfe   : > { %v1055_v3 = vpop.eup %1054  ;;  %1080 = vrcp.f32 %v728_v61  ;;  %v1389_v5 = vpop.f32.mrf.mxu0  ;;  %v556_v16 = vadd.f32 %v555_v0, %v1343_v40 }
  0xff   : > { %v1391_v6 = vpop.f32.mrf.mxu1  ;;  %v1057_v7 = vpop.eup %1056  ;;  %v633_v8 = vadd.f32 1.0, %v1055_v3  ;;  %1082 = vpow2.f32 %v1003_v59  ;;  %v1005_v41 = vmul.f32 -1.442695, %v419_v15 }
 0x100   : > { %v1059_v10 = vpop.eup %1058  ;;  %v729_v11 = vadd.f32 1.0, %v1057_v7  ;;  %1084 = vpow2.f32 %v1015_v62  ;;  %v424_v13 = vpop.f32.mrf.mxu0  ;;  %v1017_v44 = vmul.f32 -1.442695, %v556_v16 }
 0x101   : > { %v1061_v14 = vpop.eup %1060  ;;  %1086 = vrcp.f32 %v633_v8  ;;  %v561_v18 = vpop.f32.mrf.mxu1  ;;  %v425_v48 = vadd.f32 %v424_v13, %v1341_v39  ;;  %v548_v13 = vadd.f32 %v1377_v38, %v1351_v54 }
 0x102   : > { %v1063_v19 = vpop.eup %1062  ;;  %1088 = vrcp.f32 %v729_v11  ;;  %v1399_v25 = vpop.f32.mrf.mxu0  ;;  %v562_v57 = vadd.f32 %v561_v18, %v1343_v40 }
 0x103   : > { %v1065_v21 = vpop.eup %1064  ;;  %v666_v22 = vmul.f32 %v1063_v19, %v1043_v45  ;;  %1090 = vtanh.f32 %v399_v9  ;;  %v1401_v30 = vpop.f32.mrf.mxu1  ;;  %v1006_v0 = vmul.f32 -1.442695, %v425_v48  ;;  %v411_v9 = vadd.f32 %v1375_v37, %v1349_v51 }
 0x104   : > { %v1067_v23 = vpop.eup %1066  ;;  %v762_v24 = vmul.f32 %v1065_v21, %v1045_v52  ;;  %1092 = vtanh.f32 %v536_v12  ;;  %v430_v45 = vpop.f32.mrf.mxu0  ;;  %v1018_v4 = vmul.f32 -1.442695, %v562_v57  ;;  %v423_v57 = vadd.f32 %v1389_v5, %v1349_v51 }
 0x105   : > { %v1069_v28 = vpop.eup %1068  ;;  %v634_v29 = vadd.f32 1.0, %v1067_v23  ;;  %1094 = vpow2.f32 %v1004_v17  ;;  %v567_v49 = vpop.f32.mrf.mxu1  ;;  %v801_v5 = vadd.s32 8, %v1334_v35 }
 0x106   : > { %v1071_v31 = vpop.eup %1070  ;;  %v1403_v32 = vadd.f32 %v762_v24, %v666_v22  ;;  %v730_v33 = vadd.f32 1.0, %v1069_v28  ;;  %1096 = vpow2.f32 %v1016_v20  ;;  %v1417_v26 = vpop.f32.mrf.mxu0 }
 0x107   : > { %v1073_v34 = vpop.eup %1072  ;;  %v667_v36 = vmul.f32 %v1071_v31, %v1051_v60  ;;  %1098 = vrcp.f32 %v634_v29  ;;  %v417_v31 = vadd.f32 %v1383_v55, %v1349_v51 }
 0x108   : > { %v1075_v42 = vpop.eup %1074  ;;  %786 = vst [vmem:[%s1232_s24] sm:$0xff] %v1403_v32  ;;  %v763_v43 = vmul.f32 %v1073_v34, %v1053_v1  ;;  %1100 = vrcp.f32 %v730_v33  ;;  %v1419_v1 = vpop.f32.mrf.mxu1 }
 0x109   : > { %v1077_v46 = vpop.eup %1076  ;;  %1102 = vpow2.f32 %v1005_v41  ;;  %v436_v17 = vpop.f32.mrf.mxu0  ;;  %v554_v41 = vadd.f32 %v1385_v56, %v1351_v54 }
 0x10a   : > { %v1079_v50 = vpop.eup %1078  ;;  %v1410_v52 = vadd.f32 %v763_v43, %v667_v36  ;;  %1104 = vpow2.f32 %v1017_v44  ;;  %v573_v19 = vpop.f32.mrf.mxu1  ;;  %v437_v33 = vadd.f32 %v436_v17, %v1341_v39 }
 0x10b   : > { %v1081_v58 = vpop.eup %1080  ;;  %v668_v59 = vmul.f32 %v1079_v50, %v1059_v10  ;;  %1106 = vtanh.f32 %v405_v47  ;;  %v431_v10 = vadd.f32 %v430_v45, %v1341_v39  ;;  %v1435_v16 = vpop.f32.mrf.mxu0 }
 0x10c   : > { %v1083_v60 = vpop.eup %1082  ;;  %787 = vst [vmem:[%s1232_s24 + $0x8] sm:$0xff] %v1410_v52  ;;  %v764_v61 = vmul.f32 %v1081_v58, %v1061_v14  ;;  %1108 = vtanh.f32 %v542_v53  ;;  %v568_v14 = vadd.f32 %v567_v49, %v1343_v40  ;;  %v1440_v34 = vpop.f32.mrf.mxu1  ;;  %v1008_v47 = vmul.f32 -1.442695, %v437_v33 }
 0x10d   : > { %v1085_v62 = vpop.eup %1084  ;;  %v635_v63 = vadd.f32 1.0, %v1083_v60  ;;  %v1007_v15 = vmul.f32 -1.442695, %v431_v10  ;;  %v442_v45 = vpop.f32.mrf.mxu0  ;;  %v560_v60 = vadd.f32 %v1391_v6, %v1351_v54  ;;  %v429_v10 = vadd.f32 %v1399_v25, %v1349_v51 }
 0x10e   : > { %v1087_v27 = vpop.eup %1086  ;;  %v1421_v2 = vadd.f32 %v764_v61, %v668_v59  ;;  %v731_v3 = vadd.f32 1.0, %v1085_v62  ;;  %v1019_v38 = vmul.f32 -1.442695, %v568_v14  ;;  %v579_v48 = vpop.f32.mrf.mxu1  ;;  %v443_v58 = vadd.f32 %v442_v45, %v1341_v39 }
 0x10f   : > { %v1089_v7 = vpop.eup %1088  ;;  %v669_v8 = vmul.f32 %v1087_v27, %v1075_v42  ;;  %1110 = vrcp.f32 %v635_v63  ;;  %v574_v42 = vadd.f32 %v573_v19, %v1343_v40  ;;  %v580_v61 = vadd.f32 %v579_v48, %v1343_v40 }
 0x110   : > { %v1091_v11 = vpop.eup %1090  ;;  %788 = vst [vmem:[%s1232_s24 + $0x10] sm:$0xff] %v1421_v2  ;;  %v765_v12 = vmul.f32 %v1089_v7, %v1077_v46  ;;  %1112 = vrcp.f32 %v731_v3  ;;  %v1465_v14 = vstv %s798_s21  ;;  %v435_v33 = vadd.f32 %v1417_v26, %v1349_v51 }
 0x111   : > { %v1093_v18 = vpop.eup %1092  ;;  %1114 = vpow2.f32 %v1006_v0  ;;  %v1020_v53 = vmul.f32 -1.442695, %v574_v42  ;;  %v1021_v40 = vmul.f32 -1.442695, %v580_v61  ;;  %v814_v19 = vadd.s32 %v1465_v14, %v801_v5 }
 0x112   : > { %v1095_v20 = vpop.eup %1094  ;;  %v1431_v21 = vadd.f32 %v765_v12, %v669_v8  ;;  %1116 = vpow2.f32 %v1018_v4  ;;  %v1009_v4 = vmul.f32 -1.442695, %v443_v58  ;;  %v566_v12 = vadd.f32 %v1401_v30, %v1351_v54 }
 0x113   : > { %v1097_v37 = vpop.eup %1096  ;;  %1118 = vtanh.f32 %v411_v9  ;;  %v636_v22 = vadd.f32 1.0, %v1095_v20  ;;  %v802_v20 = vadd.s32 16, %v1334_v35  ;;  %v572_v42 = vadd.f32 %v1419_v1, %v1351_v54 }
 0x114   : > { %v1099_v23 = vpop.eup %1098  ;;  %789 = vst [vmem:[%s1232_s24 + $0x18] sm:$0xff] %v1431_v21  ;;  %1120 = vtanh.f32 %v548_v13  ;;  %v732_v24 = vadd.f32 1.0, %v1097_v37  ;;  %vm826_vm2 = vcmp.lt.s32.totalorder %v814_v19, 512  ;;  %v441_v61 = vadd.f32 %v1435_v16, %v1349_v51 }
 0x115   : > { %v1101_v28 = vpop.eup %1100  ;;  %v670_v29 = vmul.f32 %v1099_v23, %v1091_v11  ;;  %1122 = vrcp.f32 %v636_v22  ;;  %v803_v22 = vadd.s32 24, %v1334_v35  ;;  %v815_v45 = vadd.s32 %v1465_v14, %v802_v20 }
 0x116   : > { %v766_v36 = vmul.f32 %v1101_v28, %v1093_v18  ;;  %1124 = vrcp.f32 %v732_v24  ;;  %v1103_v43 = vpop.eup %1102  ;;  %v805_v24 = vadd.s32 40, %v1334_v35  ;;  %v810_v20 = vadd.s32 80, %v1334_v35 }
 0x117   : > { %1126 = vpow2.f32 %v1007_v15  ;;  %v1105_v46 = vpop.eup %1104  ;;  %v637_v55 = vadd.f32 1.0, %v1103_v43  ;;  %v804_v15 = vadd.s32 32, %v1334_v35  ;;  %vm827_vm4 = vcmp.lt.s32.totalorder %v815_v45, 512 }
 0x118   : > { %v1445_v44 = vadd.f32 %v766_v36, %v670_v29  ;;  %1128 = vpow2.f32 %v1019_v38  ;;  %v1107_v49 = vpop.eup %1106  ;;  %v733_v50 = vadd.f32 1.0, %v1105_v46  ;;  %v816_v46 = vadd.s32 %v1465_v14, %v803_v22 }
 0x119   : > { %1130 = vtanh.f32 %v417_v31  ;;  %v1109_v56 = vpop.eup %1108  ;;  %v806_v31 = vadd.s32 48, %v1334_v35  ;;  %v817_v26 = vadd.s32 %v1465_v14, %v804_v15  ;;  %v818_v48 = vadd.s32 %v1465_v14, %v805_v24 }
 0x11a   : > { %790 = vst [vmem:[%s1232_s24 + $0x20] sm:$0xff] %v1445_v44  ;;  %1132 = vtanh.f32 %v554_v41  ;;  %v813_v41 = vadd.s32 %v1465_v14, %v1334_v35  ;;  %vm828_vm5 = vcmp.lt.s32.totalorder %v816_v46, 512 }
 0x11b   : > { %1134 = vrcp.f32 %v637_v55  ;;  %vm829_vm6 = vcmp.lt.s32.totalorder %v817_v26, 512  ;;  %vm830_vm7 = vcmp.lt.s32.totalorder %v818_v48, 512 }
 0x11c   : > { %v1111_v59 = vpop.eup %1110  ;;  %1136 = vrcp.f32 %v733_v50  ;;  %vm825_vm3 = vcmp.lt.s32.totalorder %v813_v41, 512 }
 0x11d   : > { %v1113_v62 = vpop.eup %1112  ;;  %v671_v63 = vmul.f32 %v1111_v59, %v1107_v49  ;;  %1138 = vpow2.f32 %v1008_v47  ;;  %v837_v51 = vsel %vm825_vm3, %v1403_v32, 0.0 }
 0x11e   : > { %v1115_v0 = vpop.eup %1114  ;;  %v767_v27 = vmul.f32 %v1113_v62, %v1109_v56  ;;  %1140 = vpow2.f32 %v1020_v53  ;;  %v1488_v53 = vadd.s32 %v1465_v14, %v806_v31  ;;  %v807_v56 = vadd.s32 56, %v1334_v35 }
 0x11f   : > { %v1117_v3 = vpop.eup %1116  ;;  %1142 = vtanh.f32 %v423_v57  ;;  %v638_v39 = vadd.f32 1.0, %v1115_v0  ;;  %v578_v0 = vadd.f32 %v1440_v34, %v1351_v54  ;;  %v809_v54 = vadd.s32 72, %v1334_v35 }
 0x120   : > { %v1119_v7 = vpop.eup %1118  ;;  %v1457_v8 = vadd.f32 %v767_v27, %v671_v63  ;;  %1144 = vtanh.f32 %v560_v60  ;;  %v734_v6 = vadd.f32 1.0, %v1117_v3  ;;  %v838_v63 = vsel %vm826_vm2, %v1410_v52, 0.0 }
 0x121   : > { %v1121_v9 = vpop.eup %1120  ;;  %1146 = vrcp.f32 %v638_v39  ;;  %vm831_vm8 = vcmp.lt.s32.totalorder %v1488_v53, 512  ;;  %v820_v3 = vadd.s32 %v1465_v14, %v807_v56  ;;  %v839_v52 = vsel %vm827_vm4, %v1421_v2, 0.0 }
 0x122   : > { %v1123_v11 = vpop.eup %1122  ;;  %791 = vst [vmem:[%s1232_s24 + $0x28] sm:$0xff] %v1457_v8  ;;  %1148 = vrcp.f32 %v734_v6  ;;  %v867_v6 = vmul.f32 %v838_v63, %v838_v63  ;;  %v849_v2 = vadd.f32 %v838_v63, %v837_v51  ;;  %v822_v24 = vadd.s32 %v1465_v14, %v809_v54 }
 0x123   : > { %v1125_v13 = vpop.eup %1124  ;;  %v672_v17 = vmul.f32 %v1123_v11, %v1119_v7  ;;  %1150 = vpow2.f32 %v1009_v4  ;;  %v808_v4 = vadd.s32 64, %v1334_v35  ;;  %vm832_vm9 = vcmp.lt.s32.totalorder %v820_v3, 512 }
 0x124   : > { %v1127_v18 = vpop.eup %1126  ;;  %v768_v37 = vmul.f32 %v1125_v13, %v1121_v9  ;;  %1152 = vpow2.f32 %v1021_v40  ;;  %v840_v9 = vsel %vm828_vm5, %v1431_v21, 0.0  ;;  %v868_v13 = vmul.f32 %v839_v52, %v839_v52 }
 0x125   : > { %v1129_v25 = vpop.eup %1128  ;;  %1154 = vtanh.f32 %v429_v10  ;;  %v639_v30 = vadd.f32 1.0, %v1127_v18  ;;  %v841_v18 = vsel %vm829_vm6, %v1445_v44, 0.0  ;;  %v821_v19 = vadd.s32 %v1465_v14, %v808_v4 }
 0x126   : > { %v1131_v23 = vpop.eup %1130  ;;  %v1472_v38 = vadd.f32 %v768_v37, %v672_v17  ;;  %1156 = vtanh.f32 %v566_v12  ;;  %v735_v28 = vadd.f32 1.0, %v1129_v25  ;;  %v866_v12 = vmul.f32 %v837_v51, %v837_v51 }
 0x127   : > { %v1133_v29 = vpop.eup %1132  ;;  %1158 = vrcp.f32 %v639_v30  ;;  %v850_v25 = vadd.f32 %v849_v2, %v839_v52  ;;  %v869_v22 = vmul.f32 %v840_v9, %v840_v9  ;;  %v842_v30 = vsel %vm830_vm7, %v1457_v8, 0.0 }
 0x128   : > { %v1135_v36 = vpop.eup %1134  ;;  %792 = vst [vmem:[%s1232_s24 + $0x30] sm:$0xff] %v1472_v38  ;;  %1160 = vrcp.f32 %v735_v28  ;;  %v878_v21 = vadd.f32 %v867_v6, %v866_v12  ;;  %vm833_vm10 = vcmp.lt.s32.totalorder %v821_v19, 512  ;;  %v871_v45 = vmul.f32 %v842_v30, %v842_v30 }
 0x129   : > { %v1137_v43 = vpop.eup %1136  ;;  %v673_v55 = vmul.f32 %v1135_v36, %v1131_v23  ;;  %1162 = vtanh.f32 %v435_v33  ;;  %v851_v44 = vadd.f32 %v850_v25, %v840_v9  ;;  %v843_v33 = vsel %vm831_vm8, %v1472_v38, 0.0 }
 0x12a   : > { %v1139_v47 = vpop.eup %1138  ;;  %v769_v49 = vmul.f32 %v1137_v43, %v1133_v29  ;;  %1164 = vtanh.f32 %v572_v42  ;;  %v879_v28 = vadd.f32 %v878_v21, %v868_v13  ;;  %v870_v29 = vmul.f32 %v841_v18, %v841_v18 }
 0x12b   : > { %v1141_v50 = vpop.eup %1140  ;;  %v640_v1 = vadd.f32 1.0, %v1139_v47  ;;  %v852_v43 = vadd.f32 %v851_v44, %v841_v18  ;;  %v823_v8 = vadd.s32 %v1465_v14, %v810_v20  ;;  %vm834_vm11 = vcmp.lt.s32.totalorder %v822_v24, 512  ;;  %v895_v24 = vld [vmem:[%s1543_s4] sm:$0x3] }
 0x12c   : > { %v1143_v57 = vpop.eup %1142  ;;  %v1491_v58 = vadd.f32 %v769_v49, %v673_v55  ;;  %v736_v59 = vadd.f32 1.0, %v1141_v50  ;;  %v880_v42 = vadd.f32 %v879_v28, %v869_v22  ;;  %v811_v47 = vadd.s32 88, %v1334_v35 }
 0x12d   : > { %v1145_v60 = vpop.eup %1144  ;;  %1166 = vrcp.f32 %v640_v1  ;;  %v853_v49 = vadd.f32 %v852_v43, %v842_v30  ;;  %v872_v50 = vmul.f32 %v843_v33, %v843_v33  ;;  %vm835_vm12 = vcmp.lt.s32.totalorder %v823_v8, 512 }
 0x12e   : > { %v1147_v62 = vpop.eup %1146  ;;  %793 = vst [vmem:[%s1232_s24 + $0x38] sm:$0xff] %v1491_v58  ;;  %1168 = vrcp.f32 %v736_v59  ;;  %v844_v55 = vsel %vm832_vm9, %v1491_v58, 0.0  ;;  %v881_v48 = vadd.f32 %v880_v42, %v870_v29 }
 0x12f   : > { %v1149_v27 = vpop.eup %1148  ;;  %v674_v5 = vmul.f32 %v1147_v62, %v1143_v57  ;;  %1170 = vtanh.f32 %v441_v61  ;;  %v854_v57 = vadd.f32 %v853_v49, %v843_v33  ;;  %v873_v59 = vmul.f32 %v844_v55, %v844_v55 }
 0x130   : > { %v1151_v39 = vpop.eup %1150  ;;  %v770_v16 = vmul.f32 %v1149_v27, %v1145_v60  ;;  %1172 = vtanh.f32 %v578_v0  ;;  %v882_v1 = vadd.f32 %v881_v48, %v871_v45  ;;  %v824_v27 = vadd.s32 %v1465_v14, %v811_v47 }
 0x131   : > { %v1153_v7 = vpop.eup %1152  ;;  %v641_v34 = vadd.f32 1.0, %v1151_v39  ;;  %v855_v0 = vadd.f32 %v854_v57, %v844_v55 }
 0x132   : > { %v1155_v40 = vpop.eup %1154  ;;  %v782_v10 = vadd.f32 %v770_v16, %v674_v5  ;;  %v737_v32 = vadd.f32 1.0, %v1153_v7  ;;  %v883_v63 = vadd.f32 %v882_v1, %v872_v50  ;;  %vm836_vm13 = vcmp.lt.s32.totalorder %v824_v27, 512 }
 0x133   : > { %v1157_v11 = vpop.eup %1156  ;;  %1174 = vrcp.f32 %v641_v34 }
 0x134   : > { %v1159_v17 = vpop.eup %1158  ;;  %794 = vst [vmem:[%s1232_s24 + $0x40] sm:$0xff] %v782_v10  ;;  %1176 = vrcp.f32 %v737_v32  ;;  %v845_v53 = vsel %vm833_vm10, %v782_v10, 0.0  ;;  %v884_v51 = vadd.f32 %v883_v63, %v873_v59 }
 0x135   : > { %v1161_v37 = vpop.eup %1160  ;;  %v675_v15 = vmul.f32 %v1159_v17, %v1155_v40  ;;  %v874_v35 = vmul.f32 %v845_v53, %v845_v53  ;;  %v856_v52 = vadd.f32 %v855_v0, %v845_v53 }
 0x136   : > { %v771_v23 = vmul.f32 %v1161_v37, %v1157_v11  ;;  %v1163_v31 = vpop.eup %1162 }
 0x137   : > { %v1165_v41 = vpop.eup %1164  ;;  %v885_v6 = vadd.f32 %v884_v51, %v874_v35 }
 0x138   : > { %v783_v36 = vadd.f32 %v771_v23, %v675_v15 }
 0x13a   : > { %v1167_v46 = vpop.eup %1166  ;;  %795 = vst [vmem:[%s1232_s24 + $0x48] sm:$0xff] %v783_v36  ;;  %v846_v61 = vsel %vm834_vm11, %v783_v36, 0.0 }
 0x13b   : > { %v1169_v26 = vpop.eup %1168  ;;  %v676_v38 = vmul.f32 %v1167_v46, %v1163_v31  ;;  %v875_v16 = vmul.f32 %v846_v61, %v846_v61  ;;  %v857_v54 = vadd.f32 %v856_v52, %v846_v61 }
 0x13c   : > { %v772_v56 = vmul.f32 %v1169_v26, %v1165_v41  ;;  %v1171_v60 = vpop.eup %1170 }
 0x13d   : > { %v1173_v62 = vpop.eup %1172  ;;  %v886_v9 = vadd.f32 %v885_v6, %v875_v16 }
 0x13e   : > { %v784_v58 = vadd.f32 %v772_v56, %v676_v38 }
 0x140   : > { %v1175_v3 = vpop.eup %1174  ;;  %796 = vst [vmem:[%s1232_s24 + $0x50] sm:$0xff] %v784_v58  ;;  %v847_v5 = vsel %vm835_vm12, %v784_v58, 0.0 }
 0x141   : > { %v1177_v39 = vpop.eup %1176  ;;  %v677_v4 = vmul.f32 %v1175_v3, %v1171_v60  ;;  %v876_v34 = vmul.f32 %v847_v5, %v847_v5  ;;  %v858_v10 = vadd.f32 %v857_v54, %v847_v5 }
 0x142   : > { %v773_v7 = vmul.f32 %v1177_v39, %v1173_v62 }
 0x143   : > { %v887_v14 = vadd.f32 %v886_v9, %v876_v34 }
 0x144   : > { %v785_v40 = vadd.f32 %v773_v7, %v677_v4 }
 0x146   : > { %797 = vst [vmem:[%s1232_s24 + $0x58] sm:$0xff] %v785_v40  ;;  %v848_v32 = vsel %vm836_vm13, %v785_v40, 0.0 }
 0x147   : > { %v859_v11 = vadd.f32 %v858_v10, %v848_v32  ;;  %v877_v12 = vmul.f32 %v848_v32, %v848_v32 }
 0x149   : > { %v860_v2 = vrot.slane %v859_v11, 4  ;;  %v888_v13 = vadd.f32 %v887_v14, %v877_v12 }
 0x14b   : > { %v861_v17 = vadd.f32 %v860_v2, %v859_v11  ;;  %v889_v18 = vrot.slane %v888_v13, 4 }
 0x14d   : > { %v862_v19 = vrot.slane %v861_v17, 2  ;;  %v890_v20 = vadd.f32 %v889_v18, %v888_v13 }
 0x14f   : > { %v863_v37 = vadd.f32 %v862_v19, %v861_v17  ;;  %v891_v21 = vrot.slane %v890_v20, 2 }
 0x151   : > { %v864_v25 = vrot.slane %v863_v37, 1  ;;  %v892_v22 = vadd.f32 %v891_v21, %v890_v20 }
 0x153   : > { %v893_v15 = vrot.slane %v892_v22, 1  ;;  %v865_v30 = vadd.f32 %v864_v25, %v863_v37 }
 0x155   : > { %v894_v23 = vadd.f32 %v893_v15, %v892_v22 }
 0x157   : > { %v897_v28 = vsel %vm896_vm14, %v865_v30, %v894_v23 }
 0x158   : > { %v898_v44 = vadd.f32 %v897_v28, %v895_v24 }
 0x15a   : > { %899 = vst [vmem:[%s1543_s4] sm:$0x3] %v898_v44 }
 0x15b PF: > { %s15_s15 = sadd.s32 1, %s1184_s15  }
 0x15c   : > { %p12_p5 = scmp.ge.s32.totalorder %s15_s15, 8  }
 0x15e   :  { %14 = sbr.rel (!%p12_p5) target bundleno = 1 (0x1), region = 74 }

</bundles_post_ra>
